<compile_context>
chip_gen: v7x
topology: tpu7x:2x2x1
jax: 0.10.0
libtpu: 0.0.40
codegen_flags: <defaults>
</compile_context>

<pallas_src>
import jax
import jax.numpy as jnp
from jax import lax
from jax.experimental import pallas as pl
from jax.experimental.pallas import tpu as pltpu

IN_C = 144
OUT_C = 576


def relu_conv1x1_kernel(x_ref, w_ref, b_ref, o_ref):
    # x_ref: (N, IN_C)        — flattened NCHW input (spatial is 1x1)
    # w_ref: (OUT_C, IN_C)    — conv weight in native OIHW-squeezed layout
    # b_ref: (1, OUT_C)
    # o_ref: (N, OUT_C)
    x = jnp.maximum(x_ref[...], 0.0)                      # ReLU (VPU)
    # x (N, IN_C) . w (OUT_C, IN_C): contract IN_C of both -> (N, OUT_C).
    acc = lax.dot_general(
        x, w_ref[...],
        dimension_numbers=(((1,), (1,)), ((), ())),
        preferred_element_type=jnp.float32)               # MXU matmul, f32 acc
    o_ref[...] = (acc + b_ref[...]).astype(o_ref.dtype)


def relu_conv1x1(x_nchw, weight_oihw, bias):
    # x_nchw: (N, IN_C, 1, 1); weight_oihw: (OUT_C, IN_C, 1, 1); bias: (OUT_C,)
    n, c, h, w = x_nchw.shape
    assert (c, h, w) == (IN_C, 1, 1)
    x2d = x_nchw.reshape(n * h * w, c)                    # (N, 144)
    w2d = weight_oihw.reshape(OUT_C, IN_C)                # (576, 144) — no .T
    b2d = bias.reshape(1, OUT_C)                          # (1, 576)

    m = x2d.shape[0]
    cost = pl.CostEstimate(
        flops=2 * m * IN_C * OUT_C,
        transcendentals=0,
        bytes_accessed=(OUT_C * IN_C + m * IN_C + OUT_C + m * OUT_C) * 4,
    )

    out2d = pl.pallas_call(
        relu_conv1x1_kernel,
        out_shape=jax.ShapeDtypeStruct((m, OUT_C), x2d.dtype),
        in_specs=[
            pl.BlockSpec((m, IN_C), lambda: (0, 0)),
            pl.BlockSpec((OUT_C, IN_C), lambda: (0, 0)),
            pl.BlockSpec((1, OUT_C), lambda: (0, 0)),
        ],
        out_specs=pl.BlockSpec((m, OUT_C), lambda: (0, 0)),
        cost_estimate=cost,
    )(x2d, w2d, b2d)

    return out2d.reshape(n, OUT_C, h, w)                  # back to NCHW


if __name__ == "__main__":
    key = jax.random.PRNGKey(0)
    kx, kw, kb = jax.random.split(key, 3)

    # Input consistent with the module: [1, 144, 1, 1]
    x = jax.random.normal(kx, (1, IN_C, 1, 1), dtype=jnp.float32)

    # Deterministic parameter init (Conv2d(144, 576, kernel_size=1) shapes).
    fan_in = IN_C  # 1x1 kernel
    bound = 1.0 / (fan_in ** 0.5)
    weight = jax.random.uniform(kw, (OUT_C, IN_C, 1, 1),
                                minval=-bound, maxval=bound,
                                dtype=jnp.float32)
    bias = jax.random.uniform(kb, (OUT_C,), minval=-bound, maxval=bound,
                              dtype=jnp.float32)

    out = relu_conv1x1(x, weight, bias)
    jax.block_until_ready(out)

    # Pure-JAX reference check (ReLU then 1x1 conv).
    ref = (jnp.maximum(x.reshape(1, IN_C), 0.0)
           @ weight.reshape(OUT_C, IN_C).T + bias).reshape(1, OUT_C, 1, 1)
    assert out.shape == (1, OUT_C, 1, 1)
    assert jnp.allclose(out, ref, atol=1e-5, rtol=1e-5)

    print("KERNEL_OK")
</pallas_src>

<mosaic_0001>
module attributes {stable_mosaic.version = 11 : i64} {
  func.func @relu_conv1x1_kernel(%arg0: memref<1x144xf32, #tpu.memory_space<vmem>>, %arg1: memref<576x144xf32, #tpu.memory_space<vmem>>, %arg2: memref<1x576xf32, #tpu.memory_space<vmem>>, %arg3: memref<1x576xf32, #tpu.memory_space<vmem>>) attributes {dimension_semantics = [], scalar_prefetch = 0 : i64, scratch_operands = 0 : i64, tpu.core_type = #tpu.core_type<tc>} {
    %c0 = arith.constant 0 : index
    %c0_0 = arith.constant 0 : index
    %0 = vector.load %arg0[%c0, %c0_0] : memref<1x144xf32, #tpu.memory_space<vmem>>, vector<1x144xf32>
    %cst = arith.constant 0.000000e+00 : f32
    %1 = vector.broadcast %cst : f32 to vector<1x144xf32>
    %2 = arith.maximumf %0, %1 : vector<1x144xf32>
    %c0_1 = arith.constant 0 : index
    %c0_2 = arith.constant 0 : index
    %3 = vector.load %arg1[%c0_1, %c0_2] : memref<576x144xf32, #tpu.memory_space<vmem>>, vector<576x144xf32>
    %cst_3 = arith.constant dense<0.000000e+00> : vector<1x576xf32>
    %4 = tpu.matmul %2, %3, %cst_3 {dimension_numbers = #tpu.dot_dimension_numbers<[1], [1], [0], [0], [0, 0, 1, 0], [], []>} : vector<1x144xf32>, vector<576x144xf32>, vector<1x576xf32> -> vector<1x576xf32>
    %c0_4 = arith.constant 0 : index
    %c0_5 = arith.constant 0 : index
    %5 = vector.load %arg2[%c0_4, %c0_5] : memref<1x576xf32, #tpu.memory_space<vmem>>, vector<1x576xf32>
    %6 = arith.addf %4, %5 : vector<1x576xf32>
    %c0_6 = arith.constant 0 : index
    %c0_7 = arith.constant 0 : index
    %7 = vector.load %arg3[%c0_6, %c0_7] : memref<1x576xf32, #tpu.memory_space<vmem>>, vector<1x576xf32>
    tpu.vector_store %arg3[%c0_6, %c0_7], %6 {strides = array<i32>} : memref<1x576xf32, #tpu.memory_space<vmem>>, vector<1x576xf32>,
    return
  }
}

</mosaic_0001>

<bundles_post_ra>
// kernel: tpu_custom_call.1
= control target key start
LH: loop header
LB: loop body
LE: loop exit
PB: predicated region body
PF: predicated region fallthrough
CT: control target
= control target key end

     0   :  { %vm198_vm0 = vcmask 130048   ;;  %s1553_s0 = inlined_call_operand.vmem [shape: f32[1,144], index: 0, kind: input, shape index: {}]   ;;  %s1554_s1 = inlined_call_operand.vmem [shape: f32[576,144], index: 1, kind: input, shape index: {}]   ;;  %s1555_s2 = inlined_call_operand.vmem [shape: f32[1,576], index: 2, kind: input, shape index: {}]   ;;  %s1556_s3 = inlined_call_operand.hbm [shape: f32[1,576], index: 3, kind: output, shape index: {}]  }
   0x1   :  { %v18_v0 = vld [vmem:[%s1554_s1 + $0x8] sm:$0xff]  ;;  %v20_v1 = vld [vmem:[%s1554_s1 + $0x18] sm:$0xff]  ;;  %vm1007_vm1 = vmpackc.low %vm198_vm0, %vm198_vm0 }
   0x2   :  { %v82_v2 = vld [vmem:[%s1554_s1 + $0x208] sm:$0xff]  ;;  %v768_v3 = vpack.c.bf16 %v20_v1, %v18_v0  ;;  %v84_v5 = vld [vmem:[%s1554_s1 + $0x218] sm:$0xff]  ;;  %v17_v6 = vld [vmem:[%s1554_s1] sm:$0xff] }
   0x3   :  { %v848_v7 = vpack.c.bf16 %v84_v5, %v82_v2  ;;  %v19_v8 = vld [vmem:[%s1554_s1 + $0x10] sm:$0xff]  ;;  %v81_v9 = vld [vmem:[%s1554_s1 + $0x200] sm:$0xff]  ;;  %v22_v13 = vld [vmem:[%s1554_s1 + $0x28] sm:$0xff] }
   0x4   :  { %v83_v10 = vld [vmem:[%s1554_s1 + $0x210] sm:$0xff]  ;;  %770 = vmatprep.subr.msk.bf16.mxu0 %vm1007_vm1, %v768_v3  ;;  %v771_v11 = vpack.c.bf16 %v19_v8, %v17_v6  ;;  %v24_v14 = vld [vmem:[%s1554_s1 + $0x38] sm:$0xff]  ;;  %v86_v15 = vld [vmem:[%s1554_s1 + $0x228] sm:$0xff]  ;;  %v163_v3 = vlaneseq }
   0x5   :  { %v851_v12 = vpack.c.bf16 %v83_v10, %v81_v9  ;;  %850 = vmatprep.subr.msk.bf16.mxu1 %vm1007_vm1, %v848_v7  ;;  %v773_v16 = vpack.c.bf16 %v24_v14, %v22_v13  ;;  %v88_v17 = vld [vmem:[%s1554_s1 + $0x238] sm:$0xff]  ;;  %v21_v19 = vld [vmem:[%s1554_s1 + $0x20] sm:$0xff]  ;;  %v23_v20 = vld [vmem:[%s1554_s1 + $0x30] sm:$0xff] }
   0x6   :  { %772 = vmatpush1.bf16.xpose.msra.mxu0 %v771_v11  ;;  %v853_v18 = vpack.c.bf16 %v88_v17, %v86_v15  ;;  %v85_v21 = vld [vmem:[%s1554_s1 + $0x220] sm:$0xff]  ;;  %v87_v22 = vld [vmem:[%s1554_s1 + $0x230] sm:$0xff]  ;;  %v26_v23 = vld [vmem:[%s1554_s1 + $0x48] sm:$0xff]  ;;  %v776_v27 = vpack.c.bf16 %v23_v20, %v21_v19  ;;  %v1174_v10 = vshrl.u32 %v163_v3, 7 }
   0x7   :  { %852 = vmatpush1.bf16.xpose.msra.mxu1 %v851_v12  ;;  %775 = vmatprep.subr.msk.bf16.mxu0 %vm1007_vm1, %v773_v16  ;;  %v28_v24 = vld [vmem:[%s1554_s1 + $0x58] sm:$0xff]  ;;  %v90_v25 = vld [vmem:[%s1554_s1 + $0x248] sm:$0xff]  ;;  %v856_v28 = vpack.c.bf16 %v87_v22, %v85_v21  ;;  %v25_v31 = vld [vmem:[%s1554_s1 + $0x40] sm:$0xff] }
   0x8   :  { %855 = vmatprep.subr.msk.bf16.mxu1 %vm1007_vm1, %v853_v18  ;;  %v92_v26 = vld [vmem:[%s1554_s1 + $0x258] sm:$0xff]  ;;  %v778_v29 = vpack.c.bf16 %v28_v24, %v26_v23  ;;  %v27_v32 = vld [vmem:[%s1554_s1 + $0x50] sm:$0xff]  ;;  %v89_v33 = vld [vmem:[%s1554_s1 + $0x240] sm:$0xff]  ;;  %v169_v18 = vsub.s32 1, %v1174_v10 }
   0x9   :  { %v858_v30 = vpack.c.bf16 %v92_v26, %v90_v25  ;;  %v91_v34 = vld [vmem:[%s1554_s1 + $0x250] sm:$0xff]  ;;  %v30_v35 = vld [vmem:[%s1554_s1 + $0x68] sm:$0xff]  ;;  %v32_v36 = vld [vmem:[%s1554_s1 + $0x78] sm:$0xff]  ;;  %v781_v39 = vpack.c.bf16 %v27_v32, %v25_v31 }
   0xa   :  { %v94_v37 = vld [vmem:[%s1554_s1 + $0x268] sm:$0xff]  ;;  %v96_v38 = vld [vmem:[%s1554_s1 + $0x278] sm:$0xff]  ;;  %v861_v40 = vpack.c.bf16 %v91_v34, %v89_v33  ;;  %v783_v41 = vpack.c.bf16 %v32_v36, %v30_v35  ;;  %v29_v43 = vld [vmem:[%s1554_s1 + $0x60] sm:$0xff] }
   0xb   :  { %v863_v42 = vpack.c.bf16 %v96_v38, %v94_v37  ;;  %v31_v44 = vld [vmem:[%s1554_s1 + $0x70] sm:$0xff]  ;;  %v93_v45 = vld [vmem:[%s1554_s1 + $0x260] sm:$0xff]  ;;  %v34_v47 = vld [vmem:[%s1554_s1 + $0x88] sm:$0xff] }
   0xc   :  { %v95_v46 = vld [vmem:[%s1554_s1 + $0x270] sm:$0xff]  ;;  %v36_v48 = vld [vmem:[%s1554_s1 + $0x98] sm:$0xff]  ;;  %v98_v49 = vld [vmem:[%s1554_s1 + $0x288] sm:$0xff]  ;;  %v786_v51 = vpack.c.bf16 %v31_v44, %v29_v43 }
   0xd   :  { %v100_v50 = vld [vmem:[%s1554_s1 + $0x298] sm:$0xff]  ;;  %v866_v52 = vpack.c.bf16 %v95_v46, %v93_v45  ;;  %v788_v53 = vpack.c.bf16 %v36_v48, %v34_v47  ;;  %v33_v55 = vld [vmem:[%s1554_s1 + $0x80] sm:$0xff]  ;;  %v35_v56 = vld [vmem:[%s1554_s1 + $0x90] sm:$0xff] }
   0xe   :  { %777 = vmatpush1.bf16.xpose.msra.mxu0 %v776_v27  ;;  %v868_v54 = vpack.c.bf16 %v100_v50, %v98_v49  ;;  %v97_v57 = vld [vmem:[%s1554_s1 + $0x280] sm:$0xff]  ;;  %v99_v58 = vld [vmem:[%s1554_s1 + $0x290] sm:$0xff]  ;;  %v38_v59 = vld [vmem:[%s1554_s1 + $0xa8] sm:$0xff]  ;;  %v791_v63 = vpack.c.bf16 %v35_v56, %v33_v55 }
   0xf   :  { %857 = vmatpush1.bf16.xpose.msra.mxu1 %v856_v28  ;;  %780 = vmatprep.subr.msk.bf16.mxu0 %vm1007_vm1, %v778_v29  ;;  %v40_v60 = vld [vmem:[%s1554_s1 + $0xb8] sm:$0xff]  ;;  %v102_v61 = vld [vmem:[%s1554_s1 + $0x2a8] sm:$0xff]  ;;  %v871_v0 = vpack.c.bf16 %v99_v58, %v97_v57  ;;  %v37_v5 = vld [vmem:[%s1554_s1 + $0xa0] sm:$0xff] }
  0x10   :  { %860 = vmatprep.subr.msk.bf16.mxu1 %vm1007_vm1, %v858_v30  ;;  %v104_v62 = vld [vmem:[%s1554_s1 + $0x2b8] sm:$0xff]  ;;  %v793_v1 = vpack.c.bf16 %v40_v60, %v38_v59  ;;  %v39_v6 = vld [vmem:[%s1554_s1 + $0xb0] sm:$0xff]  ;;  %v101_v7 = vld [vmem:[%s1554_s1 + $0x2a0] sm:$0xff] }
  0x11   :  { %v873_v2 = vpack.c.bf16 %v104_v62, %v102_v61  ;;  %v103_v8 = vld [vmem:[%s1554_s1 + $0x2b0] sm:$0xff]  ;;  %v42_v9 = vld [vmem:[%s1554_s1 + $0xc8] sm:$0xff]  ;;  %v44_v11 = vld [vmem:[%s1554_s1 + $0xd8] sm:$0xff]  ;;  %v796_v14 = vpack.c.bf16 %v39_v6, %v37_v5 }
  0x12   :  { %v106_v12 = vld [vmem:[%s1554_s1 + $0x2c8] sm:$0xff]  ;;  %v108_v13 = vld [vmem:[%s1554_s1 + $0x2d8] sm:$0xff]  ;;  %v876_v15 = vpack.c.bf16 %v103_v8, %v101_v7  ;;  %v798_v16 = vpack.c.bf16 %v44_v11, %v42_v9  ;;  %v1189_v19 = vld [vmem:[%s1553_s0] sm:$0x3] }
  0x13   :  { %v878_v17 = vpack.c.bf16 %v108_v13, %v106_v12  ;;  %v16_v20 = vmax.f32 %v1189_v19, 0.0  ;;  %v41_v21 = vld [vmem:[%s1554_s1 + $0xc0] sm:$0xff]  ;;  %v43_v22 = vld [vmem:[%s1554_s1 + $0xd0] sm:$0xff]  ;;  %v46_v25 = vld [vmem:[%s1554_s1 + $0xe8] sm:$0xff] }
  0x14   :  { %v105_v23 = vld [vmem:[%s1554_s1 + $0x2c0] sm:$0xff]  ;;  %v107_v24 = vld [vmem:[%s1554_s1 + $0x2d0] sm:$0xff]  ;;  %v48_v27 = vld [vmem:[%s1554_s1 + $0xf8] sm:$0xff]  ;;  %v801_v30 = vpack.c.bf16 %v43_v22, %v41_v21 }
  0x15   :  { %v1215_v26 = vrot.slane %v16_v20, %v169_v18  ;;  %v110_v28 = vld [vmem:[%s1554_s1 + $0x2e8] sm:$0xff]  ;;  %v112_v29 = vld [vmem:[%s1554_s1 + $0x2f8] sm:$0xff]  ;;  %v881_v31 = vpack.c.bf16 %v107_v24, %v105_v23 }
  0x16   :  { %782 = vmatpush1.bf16.xpose.msra.mxu0 %v781_v39 }
  0x17   :  { %862 = vmatpush1.bf16.xpose.msra.mxu1 %v861_v40  ;;  %785 = vmatprep.subr.msk.bf16.mxu0 %vm1007_vm1, %v783_v41 }
  0x18   :  { %865 = vmatprep.subr.msk.bf16.mxu1 %vm1007_vm1, %v863_v42  ;;  %725 = vmatprep.mubr.msk.f32.mxu0 %vm198_vm0, %v1215_v26 }
  0x19   :  { %758 = vmatprep.mubr.msk.f32.mxu1 %vm198_vm0, %v1215_v26 }
  0x1e   :  { %787 = vmatpush1.bf16.xpose.msra.mxu0 %v786_v51 }
  0x1f   :  { %867 = vmatpush1.bf16.xpose.msra.mxu1 %v866_v52  ;;  %790 = vmatprep.subr.msk.bf16.mxu0 %vm1007_vm1, %v788_v53 }
  0x20   :  { %870 = vmatprep.subr.msk.bf16.mxu1 %vm1007_vm1, %v868_v54 }
  0x26   :  { %792 = vmatpush1.bf16.xpose.msra.mxu0 %v791_v63 }
  0x27   :  { %872 = vmatpush1.bf16.xpose.msra.mxu1 %v871_v0  ;;  %795 = vmatprep.subr.msk.bf16.mxu0 %vm1007_vm1, %v793_v1 }
  0x28   :  { %875 = vmatprep.subr.msk.bf16.mxu1 %vm1007_vm1, %v873_v2 }
  0x2e   :  { %797 = vmatpush1.bf16.xpose.msra.mxu0 %v796_v14 }
  0x2f   :  { %877 = vmatpush1.bf16.xpose.msra.mxu1 %v876_v15  ;;  %800 = vmatprep.subr.msk.bf16.mxu0 %vm1007_vm1, %v798_v16 }
  0x30   :  { %880 = vmatprep.subr.msk.bf16.mxu1 %vm1007_vm1, %v878_v17 }
  0x31   :  { %8 = vsyncpa [#allocation3], 0  ;;  %v803_v32 = vpack.c.bf16 %v48_v27, %v46_v25  ;;  %v883_v33 = vpack.c.bf16 %v112_v29, %v110_v28  ;;  %v45_v34 = vld [vmem:[%s1554_s1 + $0xe0] sm:$0xff]  ;;  %v47_v35 = vld [vmem:[%s1554_s1 + $0xf0] sm:$0xff]  ;;  %vm676_vm2 = vcmp.lt.s32.totalorder %v163_v3, 576 }
  0x32   :  { %v109_v36 = vld [vmem:[%s1554_s1 + $0x2e0] sm:$0xff]  ;;  %v111_v37 = vld [vmem:[%s1554_s1 + $0x2f0] sm:$0xff]  ;;  %v50_v38 = vld [vmem:[%s1554_s1 + $0x108] sm:$0xff]  ;;  %v806_v42 = vpack.c.bf16 %v47_v35, %v45_v34 }
  0x33   :  { %v52_v39 = vld [vmem:[%s1554_s1 + $0x118] sm:$0xff]  ;;  %v114_v40 = vld [vmem:[%s1554_s1 + $0x308] sm:$0xff]  ;;  %v886_v43 = vpack.c.bf16 %v111_v37, %v109_v36  ;;  %v49_v46 = vld [vmem:[%s1554_s1 + $0x100] sm:$0xff] }
  0x34   :  { %v116_v41 = vld [vmem:[%s1554_s1 + $0x318] sm:$0xff]  ;;  %v808_v44 = vpack.c.bf16 %v52_v39, %v50_v38  ;;  %v51_v47 = vld [vmem:[%s1554_s1 + $0x110] sm:$0xff]  ;;  %v113_v48 = vld [vmem:[%s1554_s1 + $0x300] sm:$0xff] }
  0x35   :  { %v888_v45 = vpack.c.bf16 %v116_v41, %v114_v40  ;;  %v115_v49 = vld [vmem:[%s1554_s1 + $0x310] sm:$0xff]  ;;  %v54_v50 = vld [vmem:[%s1554_s1 + $0x128] sm:$0xff]  ;;  %v56_v51 = vld [vmem:[%s1554_s1 + $0x138] sm:$0xff]  ;;  %v811_v54 = vpack.c.bf16 %v51_v47, %v49_v46 }
  0x36   :  { %802 = vmatpush1.bf16.xpose.msra.mxu0 %v801_v30  ;;  %v118_v52 = vld [vmem:[%s1554_s1 + $0x328] sm:$0xff]  ;;  %v120_v53 = vld [vmem:[%s1554_s1 + $0x338] sm:$0xff]  ;;  %v891_v55 = vpack.c.bf16 %v115_v49, %v113_v48  ;;  %v813_v56 = vpack.c.bf16 %v56_v51, %v54_v50  ;;  %v53_v58 = vld [vmem:[%s1554_s1 + $0x120] sm:$0xff] }
  0x37   :  { %882 = vmatpush1.bf16.xpose.msra.mxu1 %v881_v31  ;;  %805 = vmatprep.subr.msk.bf16.mxu0 %vm1007_vm1, %v803_v32  ;;  %v893_v57 = vpack.c.bf16 %v120_v53, %v118_v52  ;;  %v55_v59 = vld [vmem:[%s1554_s1 + $0x130] sm:$0xff]  ;;  %v117_v60 = vld [vmem:[%s1554_s1 + $0x320] sm:$0xff]  ;;  %v58_v62 = vld [vmem:[%s1554_s1 + $0x148] sm:$0xff] }
  0x38   :  { %885 = vmatprep.subr.msk.bf16.mxu1 %vm1007_vm1, %v883_v33  ;;  %v119_v61 = vld [vmem:[%s1554_s1 + $0x330] sm:$0xff]  ;;  %v60_v63 = vld [vmem:[%s1554_s1 + $0x158] sm:$0xff]  ;;  %v122_v0 = vld [vmem:[%s1554_s1 + $0x348] sm:$0xff]  ;;  %v816_v2 = vpack.c.bf16 %v55_v59, %v53_v58 }
  0x39   :  { %v124_v1 = vld [vmem:[%s1554_s1 + $0x358] sm:$0xff]  ;;  %v896_v5 = vpack.c.bf16 %v119_v61, %v117_v60  ;;  %v818_v6 = vpack.c.bf16 %v60_v63, %v58_v62  ;;  %v57_v8 = vld [vmem:[%s1554_s1 + $0x140] sm:$0xff]  ;;  %v59_v9 = vld [vmem:[%s1554_s1 + $0x150] sm:$0xff] }
  0x3a   :  { %v898_v7 = vpack.c.bf16 %v124_v1, %v122_v0  ;;  %v121_v11 = vld [vmem:[%s1554_s1 + $0x340] sm:$0xff]  ;;  %v123_v12 = vld [vmem:[%s1554_s1 + $0x350] sm:$0xff]  ;;  %v62_v13 = vld [vmem:[%s1554_s1 + $0x168] sm:$0xff]  ;;  %v821_v17 = vpack.c.bf16 %v59_v9, %v57_v8 }
  0x3b   :  { %v64_v14 = vld [vmem:[%s1554_s1 + $0x178] sm:$0xff]  ;;  %v126_v15 = vld [vmem:[%s1554_s1 + $0x368] sm:$0xff]  ;;  %v901_v21 = vpack.c.bf16 %v123_v12, %v121_v11  ;;  %v61_v24 = vld [vmem:[%s1554_s1 + $0x160] sm:$0xff] }
  0x3c   :  { %v128_v16 = vld [vmem:[%s1554_s1 + $0x378] sm:$0xff]  ;;  %v823_v22 = vpack.c.bf16 %v64_v14, %v62_v13  ;;  %v63_v25 = vld [vmem:[%s1554_s1 + $0x170] sm:$0xff]  ;;  %v125_v27 = vld [vmem:[%s1554_s1 + $0x360] sm:$0xff] }
  0x3d   :  { %v903_v23 = vpack.c.bf16 %v128_v16, %v126_v15  ;;  %v127_v28 = vld [vmem:[%s1554_s1 + $0x370] sm:$0xff]  ;;  %v66_v29 = vld [vmem:[%s1554_s1 + $0x188] sm:$0xff]  ;;  %v68_v30 = vld [vmem:[%s1554_s1 + $0x198] sm:$0xff]  ;;  %v826_v33 = vpack.c.bf16 %v63_v25, %v61_v24  ;;  %v165_v24 = vsub.s32 0, %v1174_v10 }
  0x3e   :  { %807 = vmatpush1.bf16.xpose.msra.mxu0 %v806_v42  ;;  %v130_v31 = vld [vmem:[%s1554_s1 + $0x388] sm:$0xff]  ;;  %v132_v32 = vld [vmem:[%s1554_s1 + $0x398] sm:$0xff]  ;;  %v906_v34 = vpack.c.bf16 %v127_v28, %v125_v27  ;;  %v828_v35 = vpack.c.bf16 %v68_v30, %v66_v29  ;;  %v65_v37 = vld [vmem:[%s1554_s1 + $0x180] sm:$0xff] }
  0x3f   :  { %887 = vmatpush1.bf16.xpose.msra.mxu1 %v886_v43  ;;  %810 = vmatprep.subr.msk.bf16.mxu0 %vm1007_vm1, %v808_v44  ;;  %v908_v36 = vpack.c.bf16 %v132_v32, %v130_v31  ;;  %v67_v38 = vld [vmem:[%s1554_s1 + $0x190] sm:$0xff]  ;;  %v129_v39 = vld [vmem:[%s1554_s1 + $0x380] sm:$0xff]  ;;  %v70_v41 = vld [vmem:[%s1554_s1 + $0x1a8] sm:$0xff]  ;;  %v166_v30 = vrot.slane %v16_v20, %v165_v24 }
  0x40   :  { %890 = vmatprep.subr.msk.bf16.mxu1 %vm1007_vm1, %v888_v45  ;;  %v131_v40 = vld [vmem:[%s1554_s1 + $0x390] sm:$0xff]  ;;  %v72_v42 = vld [vmem:[%s1554_s1 + $0x1b8] sm:$0xff]  ;;  %v134_v43 = vld [vmem:[%s1554_s1 + $0x3a8] sm:$0xff]  ;;  %v831_v45 = vpack.c.bf16 %v67_v38, %v65_v37 }
  0x41   :  { %v136_v44 = vld [vmem:[%s1554_s1 + $0x3b8] sm:$0xff]  ;;  %v911_v46 = vpack.c.bf16 %v131_v40, %v129_v39  ;;  %v833_v47 = vpack.c.bf16 %v72_v42, %v70_v41  ;;  %v69_v49 = vld [vmem:[%s1554_s1 + $0x1a0] sm:$0xff]  ;;  %v71_v50 = vld [vmem:[%s1554_s1 + $0x1b0] sm:$0xff] }
  0x42   :  { %v913_v48 = vpack.c.bf16 %v136_v44, %v134_v43  ;;  %v133_v51 = vld [vmem:[%s1554_s1 + $0x3a0] sm:$0xff]  ;;  %v135_v52 = vld [vmem:[%s1554_s1 + $0x3b0] sm:$0xff]  ;;  %v74_v53 = vld [vmem:[%s1554_s1 + $0x1c8] sm:$0xff] }
  0x43   :  { %v916_v58 = vpack.c.bf16 %v135_v52, %v133_v51  ;;  %v73_v61 = vld [vmem:[%s1554_s1 + $0x1c0] sm:$0xff]  ;;  %v75_v62 = vld [vmem:[%s1554_s1 + $0x1d0] sm:$0xff]  ;;  %v78_v1 = vld [vmem:[%s1554_s1 + $0x1e8] sm:$0xff] }
  0x44   :  { %v137_v63 = vld [vmem:[%s1554_s1 + $0x3c0] sm:$0xff]  ;;  %v139_v0 = vld [vmem:[%s1554_s1 + $0x3d0] sm:$0xff]  ;;  %v146_v16 = vld [vmem:[%s1554_s1 + $0x408] sm:$0xff] }
  0x45   :  { %v921_v8 = vpack.c.bf16 %v139_v0, %v137_v63  ;;  %v77_v12 = vld [vmem:[%s1554_s1 + $0x1e0] sm:$0xff]  ;;  %v79_v13 = vld [vmem:[%s1554_s1 + $0x1f0] sm:$0xff]  ;;  %v150_v28 = vld [vmem:[%s1554_s1 + $0x428] sm:$0xff] }
  0x46   :  { %812 = vmatpush1.bf16.xpose.msra.mxu0 %v811_v54  ;;  %v76_v54 = vld [vmem:[%s1554_s1 + $0x1d8] sm:$0xff]  ;;  %v141_v14 = vld [vmem:[%s1554_s1 + $0x3e0] sm:$0xff]  ;;  %v143_v15 = vld [vmem:[%s1554_s1 + $0x3f0] sm:$0xff] }
  0x47   :  { %892 = vmatpush1.bf16.xpose.msra.mxu1 %v891_v55  ;;  %815 = vmatprep.subr.msk.bf16.mxu0 %vm1007_vm1, %v813_v56  ;;  %v138_v55 = vld [vmem:[%s1554_s1 + $0x3c8] sm:$0xff]  ;;  %v140_v56 = vld [vmem:[%s1554_s1 + $0x3d8] sm:$0xff]  ;;  %v838_v59 = vpack.c.bf16 %v76_v54, %v74_v53  ;;  %v145_v25 = vld [vmem:[%s1554_s1 + $0x400] sm:$0xff] }
  0x48   :  { %895 = vmatprep.subr.msk.bf16.mxu1 %vm1007_vm1, %v893_v57  ;;  %v836_v57 = vpack.c.bf16 %v71_v50, %v69_v49  ;;  %v918_v60 = vpack.c.bf16 %v140_v56, %v138_v55  ;;  %v147_v27 = vld [vmem:[%s1554_s1 + $0x410] sm:$0xff]  ;;  %v152_v29 = vld [vmem:[%s1554_s1 + $0x438] sm:$0xff]  ;;  %v154_v20 = vld [vmem:[%s1554_s1 + $0x448] sm:$0xff] }
  0x49   :  { %v931_v31 = vpack.c.bf16 %v147_v27, %v145_v25  ;;  %v933_v32 = vpack.c.bf16 %v152_v29, %v150_v28  ;;  %v151_v19 = vld [vmem:[%s1554_s1 + $0x430] sm:$0xff]  ;;  %v158_v38 = vld [vmem:[%s1554_s1 + $0x468] sm:$0xff]  ;;  %v160_v39 = vld [vmem:[%s1554_s1 + $0x478] sm:$0xff] }
  0x4a   :  { %v155_v37 = vld [vmem:[%s1554_s1 + $0x450] sm:$0xff]  ;;  %v943_v41 = vpack.c.bf16 %v160_v39, %v158_v38  ;;  %v157_v42 = vld [vmem:[%s1554_s1 + $0x460] sm:$0xff] }
  0x4b   :  { %v159_v43 = vld [vmem:[%s1554_s1 + $0x470] sm:$0xff] }
  0x4c   :  { %v946_v44 = vpack.c.bf16 %v159_v43, %v157_v42 }
  0x4e   :  { %817 = vmatpush1.bf16.xpose.msra.mxu0 %v816_v2  ;;  %v80_v2 = vld [vmem:[%s1554_s1 + $0x1f8] sm:$0xff] }
  0x4f   :  { %897 = vmatpush1.bf16.xpose.msra.mxu1 %v896_v5  ;;  %820 = vmatprep.subr.msk.bf16.mxu0 %vm1007_vm1, %v818_v6  ;;  %v142_v5 = vld [vmem:[%s1554_s1 + $0x3e8] sm:$0xff]  ;;  %v144_v6 = vld [vmem:[%s1554_s1 + $0x3f8] sm:$0xff]  ;;  %v843_v9 = vpack.c.bf16 %v80_v2, %v78_v1 }
  0x50   :  { %900 = vmatprep.subr.msk.bf16.mxu1 %vm1007_vm1, %v898_v7  ;;  %v841_v7 = vpack.c.bf16 %v75_v62, %v73_v61  ;;  %v923_v11 = vpack.c.bf16 %v144_v6, %v142_v5  ;;  %v191_v6 = vsub.s32 4, %v1174_v10 }
  0x56   :  { %822 = vmatpush1.bf16.xpose.msra.mxu0 %v821_v17  ;;  %v148_v17 = vld [vmem:[%s1554_s1 + $0x418] sm:$0xff] }
  0x57   :  { %902 = vmatpush1.bf16.xpose.msra.mxu1 %v901_v21  ;;  %825 = vmatprep.subr.msk.bf16.mxu0 %vm1007_vm1, %v823_v22  ;;  %v846_v21 = vpack.c.bf16 %v79_v13, %v77_v12  ;;  %v926_v22 = vpack.c.bf16 %v143_v15, %v141_v14 }
  0x58   :  { %905 = vmatprep.subr.msk.bf16.mxu1 %vm1007_vm1, %v903_v23  ;;  %v928_v23 = vpack.c.bf16 %v148_v17, %v146_v16 }
  0x5e   :  { %827 = vmatpush1.bf16.xpose.msra.mxu0 %v826_v33  ;;  %v149_v33 = vld [vmem:[%s1554_s1 + $0x420] sm:$0xff] }
  0x5f   :  { %907 = vmatpush1.bf16.xpose.msra.mxu1 %v906_v34  ;;  %830 = vmatprep.subr.msk.bf16.mxu0 %vm1007_vm1, %v828_v35  ;;  %v156_v34 = vld [vmem:[%s1554_s1 + $0x458] sm:$0xff] }
  0x60   :  { %910 = vmatprep.subr.msk.bf16.mxu1 %vm1007_vm1, %v908_v36  ;;  %v938_v35 = vpack.c.bf16 %v156_v34, %v154_v20  ;;  %v153_v36 = vld [vmem:[%s1554_s1 + $0x440] sm:$0xff]  ;;  %s975_s1 = smov [#allocation2]  }
  0x61   :  { %v941_v40 = vpack.c.bf16 %v155_v37, %v153_v36 }
  0x66   :  { %832 = vmatpush1.bf16.xpose.msra.mxu0 %v831_v45  ;;  %v183_v45 = vsub.s32 2, %v1174_v10 }
  0x67   :  { %912 = vmatpush1.bf16.xpose.msra.mxu1 %v911_v46  ;;  %835 = vmatprep.subr.msk.bf16.mxu0 %vm1007_vm1, %v833_v47  ;;  %v161_v46 = vld [vmem:[%s1555_s2] sm:$0x1f]  ;;  %v974_v47 = vmov 1966171168   ;;  %s685_s2 = sshll.u32 %s975_s1, 4  ;;  %s686_s2 = int_to_ptr.vmem [resolvable:$true] %s685_s2 }
  0x68   :  { %915 = vmatprep.subr.msk.bf16.mxu1 %vm1007_vm1, %v913_v48  ;;  %v637_v4 = vunpack.c.l.s4 %v974_v47  ;;  %v187_v48 = vsub.s32 3, %v1174_v10  ;;  %v176_v49 = vrot.slane %v161_v46, %v165_v24  ;;  %v184_v50 = vrot.slane %v161_v46, %v183_v45  ;;  %s950_s27 = scalar_lea.vmem %s686_s2, 80  ;;  %s954_s28 = scalar_lea.vmem %s686_s2, 96 }
  0x69   :  { %v180_v51 = vrot.slane %v161_v46, %v169_v18  ;;  %v192_v18 = vrot.slane %v161_v46, %v191_v6  ;;  %p951_p0 = scmp.ne.s32.totalorder %s686_s2, %s950_s27  ;;  %p955_p1 = scmp.lt.s32.totalorder %s686_s2, %s686_s2 }
  0x6a   :  { %v638_v52 = vunpack.c.0.s8 %v637_v4  ;;  %v188_v53 = vrot.slane %v161_v46, %v187_v48  ;;  %p956_p2 = scmp.lt.s32.totalorder %s954_s28, %s950_s27 }
  0x6c   :  { %v641_v61 = vsub.s32 %v638_v52, %v1174_v10  ;;  %p957_p3 = por %p956_p2, %p955_p1 }
  0x6e   :  { %837 = vmatpush1.bf16.xpose.msra.mxu0 %v836_v57  ;;  %p958_p4 = pnand %p957_p3, %p951_p0 }
  0x6f   :  { %917 = vmatpush1.bf16.xpose.msra.mxu1 %v916_v58  ;;  %840 = vmatprep.subr.msk.bf16.mxu0 %vm1007_vm1, %v838_v59 }
  0x70   :  { %920 = vmatprep.subr.msk.bf16.mxu1 %vm1007_vm1, %v918_v60 }
  0x76   :  { %842 = vmatpush1.bf16.xpose.msra.mxu0 %v841_v7 }
  0x77   :  { %922 = vmatpush1.bf16.xpose.msra.mxu1 %v921_v8  ;;  %845 = vmatprep.subr.msk.bf16.mxu0 %vm1007_vm1, %v843_v9 }
  0x78   :  { %925 = vmatprep.subr.msk.bf16.mxu1 %vm1007_vm1, %v923_v11 }
  0x7e   :  { %847 = vmatpush1.bf16.xpose.msra.mxu0 %v846_v21 }
  0x7f   :  { %927 = vmatpush1.bf16.xpose.msra.mxu1 %v926_v22  ;;  %930 = vmatprep.subr.msk.bf16.mxu0 %vm1007_vm1, %v928_v23 }
  0x85   :  { %482 = vmatmul.mubr.f32.vlgmr.msra.gmra.mrb[0].mxu0 %v166_v30 }
  0x86   :  { %553 = vmatmul.mubr.f32.vlgmr.msra.gmra.mrb[0].mxu1 %v166_v30  ;;  %932 = vmatpush1.bf16.xpose.msra.mxu0 %v931_v31 }
  0x87   :  { %767 = vmatprep.mubr.msk.f32.mxu0 %vm198_vm0, %v1215_v26  ;;  %935 = vmatprep.subr.msk.bf16.mxu0 %vm1007_vm1, %v933_v32  ;;  %v936_v26 = vpack.c.bf16 %v151_v19, %v149_v33 }
  0x8e   :  { %937 = vmatpush1.bf16.xpose.msra.mxu0 %v936_v26 }
  0x8f   :  { %940 = vmatprep.subr.msk.bf16.mxu0 %vm1007_vm1, %v938_v35 }
  0x96   :  { %942 = vmatpush1.bf16.xpose.msra.mxu0 %v941_v40 }
  0x97   :  { %945 = vmatprep.subr.msk.bf16.mxu0 %vm1007_vm1, %v943_v41 }
  0x9e   :  { %947 = vmatpush1.bf16.xpose.msra.mxu0 %v946_v44 }
  0xa5   :  { %624 = vmatmul.mubr.f32.vlgmr.msra.gmra.mrb[2].mxu0 %v166_v30 }
 0x158   :  { %v483_v54 = vpop.f32.mrb[0].mxu0 }
 0x159   :  { %v554_v55 = vpop.f32.mrb[0].mxu1  ;;  %v484_v56 = vadd.f32 %v483_v54, %v176_v49  ;;  %v485_v58 = vpop.f32.mrb[1].mxu0 }
 0x15a   :  { %v555_v57 = vadd.f32 %v554_v55, %v184_v50  ;;  %v556_v59 = vpop.f32.mrb[1].mxu1  ;;  %v486_v60 = vadd.f32 %v485_v58, %v180_v51 }
 0x15b   :  { %v557_v62 = vadd.f32 %v556_v59, %v188_v53 }
 0x15c   :  { %v634_v63 = vcombine.low %v484_v56, %v486_v60 }
 0x15d   :  { %v635_v0 = vcombine.low %v555_v57, %v557_v62 }
 0x15e   :  { %v642_v1 = vrot.slane %v634_v63, %v641_v61 }
 0x15f   :  { %v649_v2 = vrot.slane %v635_v0, %v641_v61 }
 0x161   :  { %v657_v5 = vcombine.low %v642_v1, %v649_v2 }
 0x163   :  { %v664_v13 = vrot.slane %v657_v5, %v641_v61 }
 0x178   :  { %v625_v7 = vpop.f32.mrb[2].mxu0 }
 0x179   :  { %v626_v8 = vadd.f32 %v625_v7, %v192_v18  ;;  %v627_v9 = vpop.f32.mrb[3].mxu0 }
 0x17b   :  { %v656_v11 = vrot.slane %v626_v8, %v641_v61 }
 0x17d   :  { %v671_v12 = vrot.slane %v656_v11, %v641_v61 }
 0x17f   :  { %v672_v14 = vcombine.low %v664_v13, %v671_v12 }
 0x181   :  { %678 = vst.msk [vmem:[#allocation2] sm:$0x1f] %vm676_vm2, %v672_v14 }
 0x182   :  { %961 = shalt.err (!%p958_p4)
}
 0x183   :  { %s962_s4 = scalar_lea.hbm %s1556_s3, 80 }
 0x184   :  { %p963_p5 = scmp.ne.s32.totalorder %s1556_s3, %s962_s4  ;;  %p966_p6 = scmp.lt.u32.totalorder %s962_s4, %s1556_s3 }
 0x186   :  { %p968_p7 = pnand %p966_p6, %p963_p5 }
 0x188   :  { %971 = shalt.err (!%p968_p7)
}
 0x189   :  { %688 = dma.vmem_to_hbm [thread:$0]  %s686_s2, 80, %s1556_s3, [#allocation3]  }
 0x18a   :  { %972 = dma.done.wait [#allocation3], 80  }
 0x18b   :  { %973 = vsyncadd [#allocation3], 4294967216 }
 0x18c   :  { %692 = vsyncpa [#allocation3], 1 }

</bundles_post_ra>
